<compile_context>
chip_gen: v7x
topology: tpu7x:2x2x1
jax: 0.10.0
libtpu: 0.0.40
codegen_flags: <defaults>
</compile_context>

<pallas_src>
import jax
import jax.numpy as jnp
from jax.experimental import pallas as pl
from jax.experimental.pallas import tpu as pltpu

DIM_INPUT = 4                 # CartPole-v0 observation size
DIM_1 = 16
DIM_OUTPUT = 2                # CartPole-v0 action space size
DIM_HEAD = DIM_OUTPUT + 1     # fused fc2 (2 logits) + fc3 (1 value) = 3 rows

TB_MAX = 1024                 # batch tile (lanes); multiple of 128, well inside
                              # scoped VMEM on v5e/v6e/v7x


def policy_kernel(x_ref, w1_ref, b1_ref, w23_ref, b23_ref, out_ref):
    """One batch tile, batch-in-lanes layout.

    x_ref   : (4, TB)   observations, transposed
    w1_ref  : (16, 4)   fc1 weight (out, in)
    b1_ref  : (16, 1)   fc1 bias
    w23_ref : (3, 16)   fused fc2/fc3 weight (out, in)
    b23_ref : (3, 1)    fused fc2/fc3 bias
    out_ref : (3, TB)   rows 0..1 = action probs, row 2 = state value
    """
    x = x_ref[...]
    w1 = w1_ref[...]
    w23 = w23_ref[...]

    # fc1: h = relu(W1 @ x + b1) as an unrolled VPU outer-product MAC (K = 4).
    h = b1_ref[...] + w1[:, 0:1] * x[0:1, :]
    for k in range(1, DIM_INPUT):
        h = h + w1[:, k:k + 1] * x[k:k + 1, :]
    h = jnp.maximum(h, 0.0)                               # (16, TB)

    # fused fc2/fc3: o = W23 @ h + b23, unrolled VPU MAC (K = 16).
    o = b23_ref[...] + w23[:, 0:1] * h[0:1, :]
    for j in range(1, DIM_1):
        o = o + w23[:, j:j + 1] * h[j:j + 1, :]           # (3, TB)

    # 2-class softmax via sigmoid: p1 = 1 / (1 + exp(l0 - l1)), p0 = 1 - p1.
    # (exp goes to the EUP; no cross-lane max/sum over a 2-wide slice.)
    e = jnp.exp(o[0:1, :] - o[1:2, :])
    p1 = 1.0 / (1.0 + e)
    p0 = 1.0 - p1

    # Lane-dense stores (TB lanes each).
    out_ref[0:1, :] = p0
    out_ref[1:2, :] = p1
    out_ref[2:3, :] = o[2:3, :]


def _round_up(n, m):
    return ((n + m - 1) // m) * m


@jax.jit
def policy_forward(x, w1, b1, w2, b2, w3, b3):
    """Returns (probs (B, 2), values (B, 1)) — same semantics as the PyTorch Policy."""
    B = x.shape[0]

    # Wrapper-side layout plumbing: fuse fc2/fc3 and go batch-in-lanes.
    w1_t = w1.T                                              # (16, 4)
    b1_t = b1.reshape(1, DIM_1).T                            # (16, 1)
    w23_t = jnp.concatenate([w2, w3], axis=1).T              # (3, 16)
    b23_t = jnp.concatenate(
        [b2.reshape(1, DIM_OUTPUT), b3.reshape(1, 1)], axis=1).T   # (3, 1)

    # Batch tile: lane-dense (multiple of 128), capped at TB_MAX rows.
    tb = min(TB_MAX, _round_up(max(B, 1), 128))
    b_pad = _round_up(B, tb)
    x_t = jnp.pad(x.astype(jnp.float32), ((0, b_pad - B), (0, 0))).T   # (4, b_pad)

    grid = (b_pad // tb,)

    out_t = pl.pallas_call(
        policy_kernel,
        grid=grid,
        in_specs=[
            pl.BlockSpec((DIM_INPUT, tb), lambda i: (0, i)),     # x^T tile
            pl.BlockSpec((DIM_1, DIM_INPUT), lambda i: (0, 0)),  # W1 (resident)
            pl.BlockSpec((DIM_1, 1), lambda i: (0, 0)),          # b1
            pl.BlockSpec((DIM_HEAD, DIM_1), lambda i: (0, 0)),   # W23
            pl.BlockSpec((DIM_HEAD, 1), lambda i: (0, 0)),       # b23
        ],
        out_specs=pl.BlockSpec((DIM_HEAD, tb), lambda i: (0, i)),
        out_shape=jax.ShapeDtypeStruct((DIM_HEAD, b_pad), jnp.float32),
        compiler_params=pltpu.CompilerParams(
            dimension_semantics=("parallel",)),
        cost_estimate=pl.CostEstimate(
            flops=2 * b_pad * (DIM_INPUT * DIM_1 + DIM_1 * DIM_HEAD),
            transcendentals=b_pad,
            bytes_accessed=4 * b_pad * (DIM_INPUT + DIM_HEAD)),
    )(x_t, w1_t, b1_t, w23_t, b23_t)

    probs = out_t[:DIM_OUTPUT, :B].T                         # (B, 2)
    values = out_t[DIM_OUTPUT:DIM_HEAD, :B].T                # (B, 1)
    return probs, values


def init_params(key):
    """Deterministic init mimicking PyTorch Linear default U[-1/sqrt(fan_in), +]."""
    ks = jax.random.split(key, 6)

    def uniform(k, shape, fan_in):
        bound = 1.0 / jnp.sqrt(float(fan_in))
        return jax.random.uniform(k, shape, jnp.float32, -bound, bound)

    w1 = uniform(ks[0], (DIM_INPUT, DIM_1), DIM_INPUT)
    b1 = uniform(ks[1], (1, DIM_1), DIM_INPUT)
    w2 = uniform(ks[2], (DIM_1, DIM_OUTPUT), DIM_1)
    b2 = uniform(ks[3], (1, DIM_OUTPUT), DIM_1)
    w3 = uniform(ks[4], (DIM_1, 1), DIM_1)
    b3 = uniform(ks[5], (1, 1), DIM_1)
    return w1, b1, w2, b2, w3, b3


def policy_ref(x, w1, b1, w2, b2, w3, b3):
    """Pure-JAX reference (HIGHEST precision to match exact f32 VPU MACs)."""
    hp = jax.lax.Precision.HIGHEST
    h = jnp.maximum(jnp.dot(x, w1, precision=hp) + b1, 0.0)
    probs = jax.nn.softmax(jnp.dot(h, w2, precision=hp) + b2, axis=1)
    values = jnp.dot(h, w3, precision=hp) + b3
    return probs, values


if __name__ == "__main__":
    key = jax.random.PRNGKey(0)
    k_params, k_x1, k_x2 = jax.random.split(key, 3)
    params = init_params(k_params)

    # Small batch (single tile, padded to 128 lanes).
    batch = 2
    x = jax.random.normal(k_x1, (batch, DIM_INPUT), dtype=jnp.float32)
    probs, values = policy_forward(x, *params)
    jax.block_until_ready((probs, values))

    probs_r, values_r = policy_ref(x, *params)
    assert probs.shape == (batch, DIM_OUTPUT)
    assert values.shape == (batch, 1)
    assert jnp.allclose(probs, probs_r, atol=1e-4, rtol=1e-4)
    assert jnp.allclose(values, values_r, atol=1e-4, rtol=1e-4)
    assert jnp.allclose(jnp.sum(probs, axis=1), 1.0, atol=1e-5)

    # Larger batch exercising the multi-tile grid + padding path.
    batch2 = 2500
    x2 = jax.random.normal(k_x2, (batch2, DIM_INPUT), dtype=jnp.float32)
    probs2, values2 = policy_forward(x2, *params)
    jax.block_until_ready((probs2, values2))
    probs2_r, values2_r = policy_ref(x2, *params)
    assert jnp.allclose(probs2, probs2_r, atol=1e-4, rtol=1e-4)
    assert jnp.allclose(values2, values2_r, atol=1e-4, rtol=1e-4)

    print("KERNEL_OK")
</pallas_src>

<mosaic_0001>
module attributes {stable_mosaic.version = 11 : i64} {
  func.func @policy_kernel(%arg0: i32, %arg1: memref<4x128xf32, #tpu.memory_space<vmem>>, %arg2: memref<16x4xf32, #tpu.memory_space<vmem>>, %arg3: memref<16x1xf32, #tpu.memory_space<vmem>>, %arg4: memref<3x16xf32, #tpu.memory_space<vmem>>, %arg5: memref<3x1xf32, #tpu.memory_space<vmem>>, %arg6: memref<3x128xf32, #tpu.memory_space<vmem>>) attributes {dimension_semantics = [#tpu.dimension_semantics<parallel>], iteration_bounds = array<i64: 1>, scalar_prefetch = 0 : i64, scratch_operands = 0 : i64, tpu.core_type = #tpu.core_type<tc>, window_params = [{transform_indices = @transform_0, window_bounds = array<i64: 4, 128>}, {pipeline_mode = #tpu.pipeline_mode<synchronous>, transform_indices = @transform_1, window_bounds = array<i64: 16, 4>}, {pipeline_mode = #tpu.pipeline_mode<synchronous>, transform_indices = @transform_2, window_bounds = array<i64: 16, 1>}, {pipeline_mode = #tpu.pipeline_mode<synchronous>, transform_indices = @transform_3, window_bounds = array<i64: 3, 16>}, {pipeline_mode = #tpu.pipeline_mode<synchronous>, transform_indices = @transform_4, window_bounds = array<i64: 3, 1>}, {transform_indices = @transform_5, window_bounds = array<i64: 3, 128>}]} {
    %c0 = arith.constant 0 : index
    %c0_0 = arith.constant 0 : index
    %0 = vector.load %arg1[%c0, %c0_0] : memref<4x128xf32, #tpu.memory_space<vmem>>, vector<4x128xf32>
    %c0_1 = arith.constant 0 : index
    %c0_2 = arith.constant 0 : index
    %1 = vector.load %arg2[%c0_1, %c0_2] : memref<16x4xf32, #tpu.memory_space<vmem>>, vector<16x4xf32>
    %c0_3 = arith.constant 0 : index
    %c0_4 = arith.constant 0 : index
    %2 = vector.load %arg4[%c0_3, %c0_4] : memref<3x16xf32, #tpu.memory_space<vmem>>, vector<3x16xf32>
    %c0_5 = arith.constant 0 : index
    %c0_6 = arith.constant 0 : index
    %3 = vector.load %arg3[%c0_5, %c0_6] : memref<16x1xf32, #tpu.memory_space<vmem>>, vector<16x1xf32>
    %4 = vector.extract_strided_slice %1 {offsets = [0, 0], sizes = [16, 1], strides = [1, 1]} : vector<16x4xf32> to vector<16x1xf32>
    %5 = vector.extract_strided_slice %0 {offsets = [0, 0], sizes = [1, 128], strides = [1, 1]} : vector<4x128xf32> to vector<1x128xf32>
    %6 = vector.broadcast %4 : vector<16x1xf32> to vector<16x128xf32>
    %7 = vector.broadcast %5 : vector<1x128xf32> to vector<16x128xf32>
    %8 = arith.mulf %6, %7 : vector<16x128xf32>
    %9 = vector.broadcast %3 : vector<16x1xf32> to vector<16x128xf32>
    %10 = arith.addf %9, %8 : vector<16x128xf32>
    %11 = vector.extract_strided_slice %1 {offsets = [0, 1], sizes = [16, 1], strides = [1, 1]} : vector<16x4xf32> to vector<16x1xf32>
    %12 = vector.extract_strided_slice %0 {offsets = [1, 0], sizes = [1, 128], strides = [1, 1]} : vector<4x128xf32> to vector<1x128xf32>
    %13 = vector.broadcast %11 : vector<16x1xf32> to vector<16x128xf32>
    %14 = vector.broadcast %12 : vector<1x128xf32> to vector<16x128xf32>
    %15 = arith.mulf %13, %14 : vector<16x128xf32>
    %16 = arith.addf %10, %15 : vector<16x128xf32>
    %17 = vector.extract_strided_slice %1 {offsets = [0, 2], sizes = [16, 1], strides = [1, 1]} : vector<16x4xf32> to vector<16x1xf32>
    %18 = vector.extract_strided_slice %0 {offsets = [2, 0], sizes = [1, 128], strides = [1, 1]} : vector<4x128xf32> to vector<1x128xf32>
    %19 = vector.broadcast %17 : vector<16x1xf32> to vector<16x128xf32>
    %20 = vector.broadcast %18 : vector<1x128xf32> to vector<16x128xf32>
    %21 = arith.mulf %19, %20 : vector<16x128xf32>
    %22 = arith.addf %16, %21 : vector<16x128xf32>
    %23 = vector.extract_strided_slice %1 {offsets = [0, 3], sizes = [16, 1], strides = [1, 1]} : vector<16x4xf32> to vector<16x1xf32>
    %24 = vector.extract_strided_slice %0 {offsets = [3, 0], sizes = [1, 128], strides = [1, 1]} : vector<4x128xf32> to vector<1x128xf32>
    %25 = vector.broadcast %23 : vector<16x1xf32> to vector<16x128xf32>
    %26 = vector.broadcast %24 : vector<1x128xf32> to vector<16x128xf32>
    %27 = arith.mulf %25, %26 : vector<16x128xf32>
    %28 = arith.addf %22, %27 : vector<16x128xf32>
    %cst = arith.constant 0.000000e+00 : f32
    %29 = vector.broadcast %cst : f32 to vector<16x128xf32>
    %30 = arith.maximumf %28, %29 : vector<16x128xf32>
    %c0_7 = arith.constant 0 : index
    %c0_8 = arith.constant 0 : index
    %31 = vector.load %arg5[%c0_7, %c0_8] : memref<3x1xf32, #tpu.memory_space<vmem>>, vector<3x1xf32>
    %32 = vector.extract_strided_slice %2 {offsets = [0, 0], sizes = [3, 1], strides = [1, 1]} : vector<3x16xf32> to vector<3x1xf32>
    %33 = vector.extract_strided_slice %30 {offsets = [0, 0], sizes = [1, 128], strides = [1, 1]} : vector<16x128xf32> to vector<1x128xf32>
    %34 = vector.broadcast %32 : vector<3x1xf32> to vector<3x128xf32>
    %35 = vector.broadcast %33 : vector<1x128xf32> to vector<3x128xf32>
    %36 = arith.mulf %34, %35 : vector<3x128xf32>
    %37 = vector.broadcast %31 : vector<3x1xf32> to vector<3x128xf32>
    %38 = arith.addf %37, %36 : vector<3x128xf32>
    %39 = vector.extract_strided_slice %2 {offsets = [0, 1], sizes = [3, 1], strides = [1, 1]} : vector<3x16xf32> to vector<3x1xf32>
    %40 = vector.extract_strided_slice %30 {offsets = [1, 0], sizes = [1, 128], strides = [1, 1]} : vector<16x128xf32> to vector<1x128xf32>
    %41 = vector.broadcast %39 : vector<3x1xf32> to vector<3x128xf32>
    %42 = vector.broadcast %40 : vector<1x128xf32> to vector<3x128xf32>
    %43 = arith.mulf %41, %42 : vector<3x128xf32>
    %44 = arith.addf %38, %43 : vector<3x128xf32>
    %45 = vector.extract_strided_slice %2 {offsets = [0, 2], sizes = [3, 1], strides = [1, 1]} : vector<3x16xf32> to vector<3x1xf32>
    %46 = vector.extract_strided_slice %30 {offsets = [2, 0], sizes = [1, 128], strides = [1, 1]} : vector<16x128xf32> to vector<1x128xf32>
    %47 = vector.broadcast %45 : vector<3x1xf32> to vector<3x128xf32>
    %48 = vector.broadcast %46 : vector<1x128xf32> to vector<3x128xf32>
    %49 = arith.mulf %47, %48 : vector<3x128xf32>
    %50 = arith.addf %44, %49 : vector<3x128xf32>
    %51 = vector.extract_strided_slice %2 {offsets = [0, 3], sizes = [3, 1], strides = [1, 1]} : vector<3x16xf32> to vector<3x1xf32>
    %52 = vector.extract_strided_slice %30 {offsets = [3, 0], sizes = [1, 128], strides = [1, 1]} : vector<16x128xf32> to vector<1x128xf32>
    %53 = vector.broadcast %51 : vector<3x1xf32> to vector<3x128xf32>
    %54 = vector.broadcast %52 : vector<1x128xf32> to vector<3x128xf32>
    %55 = arith.mulf %53, %54 : vector<3x128xf32>
    %56 = arith.addf %50, %55 : vector<3x128xf32>
    %57 = vector.extract_strided_slice %2 {offsets = [0, 4], sizes = [3, 1], strides = [1, 1]} : vector<3x16xf32> to vector<3x1xf32>
    %58 = vector.extract_strided_slice %30 {offsets = [4, 0], sizes = [1, 128], strides = [1, 1]} : vector<16x128xf32> to vector<1x128xf32>
    %59 = vector.broadcast %57 : vector<3x1xf32> to vector<3x128xf32>
    %60 = vector.broadcast %58 : vector<1x128xf32> to vector<3x128xf32>
    %61 = arith.mulf %59, %60 : vector<3x128xf32>
    %62 = arith.addf %56, %61 : vector<3x128xf32>
    %63 = vector.extract_strided_slice %2 {offsets = [0, 5], sizes = [3, 1], strides = [1, 1]} : vector<3x16xf32> to vector<3x1xf32>
    %64 = vector.extract_strided_slice %30 {offsets = [5, 0], sizes = [1, 128], strides = [1, 1]} : vector<16x128xf32> to vector<1x128xf32>
    %65 = vector.broadcast %63 : vector<3x1xf32> to vector<3x128xf32>
    %66 = vector.broadcast %64 : vector<1x128xf32> to vector<3x128xf32>
    %67 = arith.mulf %65, %66 : vector<3x128xf32>
    %68 = arith.addf %62, %67 : vector<3x128xf32>
    %69 = vector.extract_strided_slice %2 {offsets = [0, 6], sizes = [3, 1], strides = [1, 1]} : vector<3x16xf32> to vector<3x1xf32>
    %70 = vector.extract_strided_slice %30 {offsets = [6, 0], sizes = [1, 128], strides = [1, 1]} : vector<16x128xf32> to vector<1x128xf32>
    %71 = vector.broadcast %69 : vector<3x1xf32> to vector<3x128xf32>
    %72 = vector.broadcast %70 : vector<1x128xf32> to vector<3x128xf32>
    %73 = arith.mulf %71, %72 : vector<3x128xf32>
    %74 = arith.addf %68, %73 : vector<3x128xf32>
    %75 = vector.extract_strided_slice %2 {offsets = [0, 7], sizes = [3, 1], strides = [1, 1]} : vector<3x16xf32> to vector<3x1xf32>
    %76 = vector.extract_strided_slice %30 {offsets = [7, 0], sizes = [1, 128], strides = [1, 1]} : vector<16x128xf32> to vector<1x128xf32>
    %77 = vector.broadcast %75 : vector<3x1xf32> to vector<3x128xf32>
    %78 = vector.broadcast %76 : vector<1x128xf32> to vector<3x128xf32>
    %79 = arith.mulf %77, %78 : vector<3x128xf32>
    %80 = arith.addf %74, %79 : vector<3x128xf32>
    %81 = vector.extract_strided_slice %2 {offsets = [0, 8], sizes = [3, 1], strides = [1, 1]} : vector<3x16xf32> to vector<3x1xf32>
    %82 = vector.extract_strided_slice %30 {offsets = [8, 0], sizes = [1, 128], strides = [1, 1]} : vector<16x128xf32> to vector<1x128xf32>
    %83 = vector.broadcast %81 : vector<3x1xf32> to vector<3x128xf32>
    %84 = vector.broadcast %82 : vector<1x128xf32> to vector<3x128xf32>
    %85 = arith.mulf %83, %84 : vector<3x128xf32>
    %86 = arith.addf %80, %85 : vector<3x128xf32>
    %87 = vector.extract_strided_slice %2 {offsets = [0, 9], sizes = [3, 1], strides = [1, 1]} : vector<3x16xf32> to vector<3x1xf32>
    %88 = vector.extract_strided_slice %30 {offsets = [9, 0], sizes = [1, 128], strides = [1, 1]} : vector<16x128xf32> to vector<1x128xf32>
    %89 = vector.broadcast %87 : vector<3x1xf32> to vector<3x128xf32>
    %90 = vector.broadcast %88 : vector<1x128xf32> to vector<3x128xf32>
    %91 = arith.mulf %89, %90 : vector<3x128xf32>
    %92 = arith.addf %86, %91 : vector<3x128xf32>
    %93 = vector.extract_strided_slice %2 {offsets = [0, 10], sizes = [3, 1], strides = [1, 1]} : vector<3x16xf32> to vector<3x1xf32>
    %94 = vector.extract_strided_slice %30 {offsets = [10, 0], sizes = [1, 128], strides = [1, 1]} : vector<16x128xf32> to vector<1x128xf32>
    %95 = vector.broadcast %93 : vector<3x1xf32> to vector<3x128xf32>
    %96 = vector.broadcast %94 : vector<1x128xf32> to vector<3x128xf32>
    %97 = arith.mulf %95, %96 : vector<3x128xf32>
    %98 = arith.addf %92, %97 : vector<3x128xf32>
    %99 = vector.extract_strided_slice %2 {offsets = [0, 11], sizes = [3, 1], strides = [1, 1]} : vector<3x16xf32> to vector<3x1xf32>
    %100 = vector.extract_strided_slice %30 {offsets = [11, 0], sizes = [1, 128], strides = [1, 1]} : vector<16x128xf32> to vector<1x128xf32>
    %101 = vector.broadcast %99 : vector<3x1xf32> to vector<3x128xf32>
    %102 = vector.broadcast %100 : vector<1x128xf32> to vector<3x128xf32>
    %103 = arith.mulf %101, %102 : vector<3x128xf32>
    %104 = arith.addf %98, %103 : vector<3x128xf32>
    %105 = vector.extract_strided_slice %2 {offsets = [0, 12], sizes = [3, 1], strides = [1, 1]} : vector<3x16xf32> to vector<3x1xf32>
    %106 = vector.extract_strided_slice %30 {offsets = [12, 0], sizes = [1, 128], strides = [1, 1]} : vector<16x128xf32> to vector<1x128xf32>
    %107 = vector.broadcast %105 : vector<3x1xf32> to vector<3x128xf32>
    %108 = vector.broadcast %106 : vector<1x128xf32> to vector<3x128xf32>
    %109 = arith.mulf %107, %108 : vector<3x128xf32>
    %110 = arith.addf %104, %109 : vector<3x128xf32>
    %111 = vector.extract_strided_slice %2 {offsets = [0, 13], sizes = [3, 1], strides = [1, 1]} : vector<3x16xf32> to vector<3x1xf32>
    %112 = vector.extract_strided_slice %30 {offsets = [13, 0], sizes = [1, 128], strides = [1, 1]} : vector<16x128xf32> to vector<1x128xf32>
    %113 = vector.broadcast %111 : vector<3x1xf32> to vector<3x128xf32>
    %114 = vector.broadcast %112 : vector<1x128xf32> to vector<3x128xf32>
    %115 = arith.mulf %113, %114 : vector<3x128xf32>
    %116 = arith.addf %110, %115 : vector<3x128xf32>
    %117 = vector.extract_strided_slice %2 {offsets = [0, 14], sizes = [3, 1], strides = [1, 1]} : vector<3x16xf32> to vector<3x1xf32>
    %118 = vector.extract_strided_slice %30 {offsets = [14, 0], sizes = [1, 128], strides = [1, 1]} : vector<16x128xf32> to vector<1x128xf32>
    %119 = vector.broadcast %117 : vector<3x1xf32> to vector<3x128xf32>
    %120 = vector.broadcast %118 : vector<1x128xf32> to vector<3x128xf32>
    %121 = arith.mulf %119, %120 : vector<3x128xf32>
    %122 = arith.addf %116, %121 : vector<3x128xf32>
    %123 = vector.extract_strided_slice %2 {offsets = [0, 15], sizes = [3, 1], strides = [1, 1]} : vector<3x16xf32> to vector<3x1xf32>
    %124 = vector.extract_strided_slice %30 {offsets = [15, 0], sizes = [1, 128], strides = [1, 1]} : vector<16x128xf32> to vector<1x128xf32>
    %125 = vector.broadcast %123 : vector<3x1xf32> to vector<3x128xf32>
    %126 = vector.broadcast %124 : vector<1x128xf32> to vector<3x128xf32>
    %127 = arith.mulf %125, %126 : vector<3x128xf32>
    %128 = arith.addf %122, %127 : vector<3x128xf32>
    %129 = vector.extract_strided_slice %128 {offsets = [0, 0], sizes = [1, 128], strides = [1, 1]} : vector<3x128xf32> to vector<1x128xf32>
    %130 = vector.extract_strided_slice %128 {offsets = [1, 0], sizes = [1, 128], strides = [1, 1]} : vector<3x128xf32> to vector<1x128xf32>
    %131 = arith.subf %129, %130 : vector<1x128xf32>
    %132 = math.exp %131 : vector<1x128xf32>
    %cst_9 = arith.constant 1.000000e+00 : f32
    %133 = vector.broadcast %cst_9 : f32 to vector<1x128xf32>
    %134 = arith.addf %133, %132 : vector<1x128xf32>
    %cst_10 = arith.constant 1.000000e+00 : f32
    %135 = vector.broadcast %cst_10 : f32 to vector<1x128xf32>
    %136 = arith.divf %135, %134 : vector<1x128xf32>
    %cst_11 = arith.constant 1.000000e+00 : f32
    %137 = vector.broadcast %cst_11 : f32 to vector<1x128xf32>
    %138 = arith.subf %137, %136 : vector<1x128xf32>
    %c0_12 = arith.constant 0 : index
    %c0_13 = arith.constant 0 : index
    %139 = vector.load %arg6[%c0_12, %c0_13] : memref<3x128xf32, #tpu.memory_space<vmem>>, vector<1x128xf32>
    tpu.vector_store %arg6[%c0_12, %c0_13], %138 {strides = array<i32>} : memref<3x128xf32, #tpu.memory_space<vmem>>, vector<1x128xf32>,
    %c1 = arith.constant 1 : index
    %c0_14 = arith.constant 0 : index
    %140 = vector.load %arg6[%c1, %c0_14] : memref<3x128xf32, #tpu.memory_space<vmem>>, vector<1x128xf32>
    tpu.vector_store %arg6[%c1, %c0_14], %136 {strides = array<i32>} : memref<3x128xf32, #tpu.memory_space<vmem>>, vector<1x128xf32>,
    %141 = vector.extract_strided_slice %128 {offsets = [2, 0], sizes = [1, 128], strides = [1, 1]} : vector<3x128xf32> to vector<1x128xf32>
    %c2 = arith.constant 2 : index
    %c0_15 = arith.constant 0 : index
    %142 = vector.load %arg6[%c2, %c0_15] : memref<3x128xf32, #tpu.memory_space<vmem>>, vector<1x128xf32>
    tpu.vector_store %arg6[%c2, %c0_15], %141 {strides = array<i32>} : memref<3x128xf32, #tpu.memory_space<vmem>>, vector<1x128xf32>,
    return
  }
  func.func @transform_0(%arg0: i32) -> (i32, i32) {
    %c0_i32 = arith.constant 0 : i32
    %c0_i32_0 = arith.constant 0 : i32
    return %c0_i32, %arg0 : i32, i32
  }
  func.func @transform_1(%arg0: i32) -> (i32, i32) {
    %c0_i32 = arith.constant 0 : i32
    %c0_i32_0 = arith.constant 0 : i32
    %c0_i32_1 = arith.constant 0 : i32
    return %c0_i32, %c0_i32_0 : i32, i32
  }
  func.func @transform_2(%arg0: i32) -> (i32, i32) {
    %c0_i32 = arith.constant 0 : i32
    %c0_i32_0 = arith.constant 0 : i32
    %c0_i32_1 = arith.constant 0 : i32
    return %c0_i32, %c0_i32_0 : i32, i32
  }
  func.func @transform_3(%arg0: i32) -> (i32, i32) {
    %c0_i32 = arith.constant 0 : i32
    %c0_i32_0 = arith.constant 0 : i32
    %c0_i32_1 = arith.constant 0 : i32
    return %c0_i32, %c0_i32_0 : i32, i32
  }
  func.func @transform_4(%arg0: i32) -> (i32, i32) {
    %c0_i32 = arith.constant 0 : i32
    %c0_i32_0 = arith.constant 0 : i32
    %c0_i32_1 = arith.constant 0 : i32
    return %c0_i32, %c0_i32_0 : i32, i32
  }
  func.func @transform_5(%arg0: i32) -> (i32, i32) {
    %c0_i32 = arith.constant 0 : i32
    %c0_i32_0 = arith.constant 0 : i32
    return %c0_i32, %arg0 : i32, i32
  }
}

</mosaic_0001>

<bundles_post_ra>
// kernel: policy_forward.1
= control target key start
LH: loop header
LB: loop body
LE: loop exit
PB: predicated region body
PF: predicated region fallthrough
CT: control target
= control target key end

     0   :  { %v331_v0 = vmov 1   ;;  %v332_v1 = vmov 0   ;;  %v333_v4 = vmov 2   ;;  %v334_v8 = vmov 3   ;;  %s437_s1 = inlined_call_operand.vmem [shape: f32[16,4], index: 1, kind: input, shape index: {}]   ;;  %s438_s2 = inlined_call_operand.vmem [shape: f32[16,1], index: 2, kind: input, shape index: {}]   ;;  %s439_s4 = inlined_call_operand.vmem [shape: f32[3,1], index: 4, kind: input, shape index: {}]   ;;  %s440_s3 = inlined_call_operand.vmem [shape: f32[3,16], index: 3, kind: input, shape index: {}]   ;;  %s441_s0 = inlined_call_operand.vmem [shape: f32[4,128], index: 0, kind: input, shape index: {}]   ;;  %s442_s5 = inlined_call_operand.vmem [shape: f32[3,128], index: 5, kind: output, shape index: {}]  }
   0x1   :  { %305 = vset.pattern.permute.xlu1 %v331_v0  ;;  %304 = vset.pattern.permute.xlu0 %v332_v1  ;;  %v21_v2 = vld [vmem:[%s437_s1] sm:$0xff]  ;;  %v22_v7 = vld [vmem:[%s437_s1 + $0x8] sm:$0xff]  ;;  %v335_v10 = vmov 5   ;;  %v336_v11 = vmov 8   ;;  %v337_v12 = vmov 11   ;;  %v338_v13 = vmov 14  }
   0x2   :  { %55 = vperm.xlu1 %305, %v21_v2   ;;  %28 = vperm.xlu0 %304, %v21_v2   ;;  %v24_v3 = vld [vmem:[%s438_s2] sm:$0xff]  ;;  %v25_v9 = vld [vmem:[%s438_s2 + $0x8] sm:$0xff]  ;;  %v339_v14 = vmov 4   ;;  %v340_v15 = vmov 15   ;;  %v341_v16 = vmov 6   ;;  %v342_v17 = vmov 7  }
   0x3   :  { %v104_v5 = vld [vmem:[%s439_s4] sm:$0x7]  ;;  %v343_v18 = vmov 9   ;;  %v344_v19 = vmov 10   ;;  %v345_v20 = vmov 12   ;;  %v346_v21 = vmov 13  }
   0x4   :  { %v23_v6 = vld [vmem:[%s440_s3] sm:$0x7]  ;;  %v36_v22 = vlaneseq }
   0x5   :  { %v20_v27 = vld [vmem:[%s441_s0] sm:$0xf] }
   0x6   :  { %306 = vset.pattern.permute.xlu1 %v333_v4  ;;  %44 = vperm.xlu0 %304, %v24_v3   ;;  %v395_v23 = vshrl.u32 %v36_v22, 7 }
   0x7   :  { %71 = vperm.xlu1 %306, %v21_v2  }
   0x8   :  { %v398_v24 = vsub.s32 0, %v395_v23  ;;  %v405_v30 = vsub.s32 1, %v395_v23  ;;  %v408_v33 = vsub.s32 2, %v395_v23  ;;  %v413_v39 = vsub.s32 3, %v395_v23 }
   0xa   :  { %117 = vperm.xlu0 %304, %v104_v5   ;;  %v39_v28 = vrot.slane %v20_v27, %v398_v24  ;;  %v65_v35 = vrot.slane %v20_v27, %v405_v30  ;;  %v81_v38 = vrot.slane %v20_v27, %v408_v33  ;;  %v97_v45 = vrot.slane %v20_v27, %v413_v39 }
   0xb   :  { %307 = vset.pattern.permute.xlu1 %v332_v1  ;;  %v187_v27 = vsub.s32 7, %v395_v23 }
   0xc   :  { %107 = vperm.xlu1 %307, %v23_v6  }
   0xe   :  { %310 = vset.pattern.permute.xlu0 %v331_v0 }
   0xf   :  { %59 = vperm.xlu0 %310, %v22_v7  }
  0x10   :  { %33 = vperm.xlu1 %307, %v22_v7  }
  0x13   :  { %311 = vset.pattern.permute.xlu0 %v334_v8 }
  0x14   :  { %308 = vset.pattern.permute.xlu1 %v331_v0  ;;  %87 = vperm.xlu0 %311, %v21_v2  }
  0x15   :  { %122 = vperm.xlu1 %308, %v23_v6  }
  0x18   :  { %142 = vperm.xlu0 %311, %v23_v6  }
  0x19   :  { %309 = vset.pattern.permute.xlu1 %v332_v1 }
  0x1a   :  { %49 = vperm.xlu1 %309, %v25_v9  }
  0x1c   :  { %315 = vset.pattern.permute.xlu0 %v335_v10 }
  0x1d   :  { %162 = vperm.xlu0 %315, %v23_v6  }
  0x1e   :  { %312 = vset.pattern.permute.xlu1 %v333_v4  ;;  %v157_v4 = vsub.s32 4, %v395_v23 }
  0x1f   :  { %132 = vperm.xlu1 %312, %v23_v6  }
  0x21   :  { %318 = vset.pattern.permute.xlu0 %v336_v11 }
  0x22   :  { %192 = vperm.xlu0 %318, %v23_v6  }
  0x23   :  { %75 = vperm.xlu1 %312, %v22_v7  }
  0x26   :  { %321 = vset.pattern.permute.xlu0 %v337_v12 }
  0x27   :  { %313 = vset.pattern.permute.xlu1 %v334_v8  ;;  %222 = vperm.xlu0 %321, %v23_v6  }
  0x28   :  { %91 = vperm.xlu1 %313, %v22_v7  }
  0x2b   :  { %324 = vset.pattern.permute.xlu0 %v338_v13 }
  0x2c   :  { %314 = vset.pattern.permute.xlu1 %v339_v14  ;;  %252 = vperm.xlu0 %324, %v23_v6   ;;  %v177_v14 = vsub.s32 6, %v395_v23 }
  0x2d   :  { %152 = vperm.xlu1 %314, %v23_v6  }
  0x30   :  { %326 = vset.pattern.permute.xlu0 %v340_v15 }
  0x31   :  { %316 = vset.pattern.permute.xlu1 %v341_v16 }
  0x32   :  { %172 = vperm.xlu1 %316, %v23_v6  }
  0x36   :  { %317 = vset.pattern.permute.xlu1 %v342_v17 }
  0x37   :  { %182 = vperm.xlu1 %317, %v23_v6  }
  0x3b   :  { %319 = vset.pattern.permute.xlu1 %v343_v18 }
  0x3c   :  { %202 = vperm.xlu1 %319, %v23_v6  }
  0x40   :  { %320 = vset.pattern.permute.xlu1 %v344_v19 }
  0x41   :  { %212 = vperm.xlu1 %320, %v23_v6  }
  0x45   :  { %322 = vset.pattern.permute.xlu1 %v345_v20 }
  0x46   :  { %232 = vperm.xlu1 %322, %v23_v6  }
  0x4a   :  { %323 = vset.pattern.permute.xlu1 %v346_v21 }
  0x4b   :  { %242 = vperm.xlu1 %323, %v23_v6  }
  0x4f   :  { %325 = vset.pattern.permute.xlu1 %v340_v15 }
  0x50   :  { %262 = vperm.xlu1 %325, %v23_v6   ;;  %v167_v6 = vsub.s32 5, %v395_v23 }
  0x81   :  { %v56_v25 = vpop.permute.xlu1 %55  ;;  %v29_v26 = vpop.permute.xlu0 %28 }
  0x82   :  { %v40_v32 = vmul.f32 %v39_v28, %v29_v26  ;;  %v66_v40 = vmul.f32 %v65_v35, %v56_v25 }
  0x85   :  { %v45_v29 = vpop.permute.xlu0 %44 }
  0x86   :  { %v72_v31 = vpop.permute.xlu1 %71  ;;  %v52_v37 = vadd.f32 %v45_v29, %v40_v32 }
  0x87   :  { %v82_v44 = vmul.f32 %v81_v38, %v72_v31 }
  0x88   :  { %v68_v43 = vadd.f32 %v66_v40, %v52_v37 }
  0x89   :  { %v118_v34 = vpop.permute.xlu0 %117 }
  0x8a   :  { %v84_v47 = vadd.f32 %v82_v44, %v68_v43 }
  0x8b   :  { %v108_v36 = vpop.permute.xlu1 %107 }
  0x8e   :  { %v60_v41 = vpop.permute.xlu0 %59 }
  0x8f   :  { %v34_v42 = vpop.permute.xlu1 %33  ;;  %v67_v0 = vmul.f32 %v65_v35, %v60_v41 }
  0x90   :  { %v41_v61 = vmul.f32 %v39_v28, %v34_v42 }
  0x93   :  { %v88_v46 = vpop.permute.xlu0 %87 }
  0x94   :  { %v98_v48 = vmul.f32 %v97_v45, %v88_v46  ;;  %v123_v49 = vpop.permute.xlu1 %122 }
  0x96   :  { %v100_v50 = vadd.f32 %v98_v48, %v84_v47 }
  0x97   :  { %v143_v5 = vpop.permute.xlu0 %142 }
  0x98   :  { %v102_v51 = vmax.f32 %v100_v50, 0.0 }
  0x99   :  { %v50_v52 = vpop.permute.xlu1 %49 }
  0x9a   :  { %v113_v53 = vrot.slane %v102_v51, %v398_v24  ;;  %v128_v56 = vrot.slane %v102_v51, %v405_v30  ;;  %v138_v60 = vrot.slane %v102_v51, %v408_v33  ;;  %v148_v1 = vrot.slane %v102_v51, %v413_v39 }
  0x9b   :  { %v53_v2 = vadd.f32 %v50_v52, %v41_v61  ;;  %v158_v12 = vrot.slane %v102_v51, %v157_v4  ;;  %v168_v15 = vrot.slane %v102_v51, %v167_v6  ;;  %v178_v26 = vrot.slane %v102_v51, %v177_v14 }
  0x9c   :  { %v114_v54 = vmul.f32 %v113_v53, %v108_v36  ;;  %v129_v59 = vmul.f32 %v128_v56, %v123_v49  ;;  %v149_v9 = vmul.f32 %v148_v1, %v143_v5  ;;  %v163_v19 = vpop.permute.xlu0 %162  ;;  %v188_v32 = vrot.slane %v102_v51, %v187_v27 }
  0x9d   :  { %v69_v10 = vadd.f32 %v67_v0, %v53_v2  ;;  %v169_v22 = vmul.f32 %v168_v15, %v163_v19 }
  0x9e   :  { %v133_v55 = vpop.permute.xlu1 %132  ;;  %v120_v57 = vadd.f32 %v118_v34, %v114_v54 }
  0x9f   :  { %v139_v63 = vmul.f32 %v138_v60, %v133_v55 }
  0xa0   :  { %v130_v62 = vadd.f32 %v129_v59, %v120_v57 }
  0xa1   :  { %v193_v40 = vpop.permute.xlu0 %192 }
  0xa2   :  { %v76_v58 = vpop.permute.xlu1 %75  ;;  %v140_v7 = vadd.f32 %v139_v63, %v130_v62 }
  0xa3   :  { %v83_v8 = vmul.f32 %v81_v38, %v76_v58 }
  0xa4   :  { %v150_v17 = vadd.f32 %v149_v9, %v140_v7 }
  0xa5   :  { %v85_v16 = vadd.f32 %v83_v8, %v69_v10 }
  0xa6   :  { %v223_v51 = vpop.permute.xlu0 %222 }
  0xa7   :  { %v92_v3 = vpop.permute.xlu1 %91 }
  0xa8   :  { %v99_v11 = vmul.f32 %v97_v45, %v92_v3 }
  0xaa   :  { %v101_v20 = vadd.f32 %v99_v11, %v85_v16 }
  0xab   :  { %v253_v58 = vpop.permute.xlu0 %252 }
  0xac   :  { %v153_v13 = vpop.permute.xlu1 %152  ;;  %v103_v28 = vmax.f32 %v101_v20, 0.0 }
  0xad   :  { %v159_v18 = vmul.f32 %v158_v12, %v153_v13 }
  0xae   :  { %v198_v35 = vrot.slane %v103_v28, %v398_v24  ;;  %v208_v43 = vrot.slane %v103_v28, %v405_v30  ;;  %v218_v46 = vrot.slane %v103_v28, %v408_v33  ;;  %v228_v47 = vrot.slane %v103_v28, %v413_v39 }
  0xaf   :  { %v160_v21 = vadd.f32 %v159_v18, %v150_v17  ;;  %v238_v53 = vrot.slane %v103_v28, %v157_v4  ;;  %v258_v56 = vrot.slane %v103_v28, %v177_v14  ;;  %v248_v57 = vrot.slane %v103_v28, %v167_v6 }
  0xb0   :  { %v199_v41 = vmul.f32 %v198_v35, %v193_v40  ;;  %v229_v24 = vmul.f32 %v228_v47, %v223_v51  ;;  %v268_v62 = vrot.slane %v103_v28, %v187_v27 }
  0xb1   :  { %v173_v25 = vpop.permute.xlu1 %172  ;;  %v170_v29 = vadd.f32 %v169_v22, %v160_v21  ;;  %v259_v61 = vmul.f32 %v258_v56, %v253_v58 }
  0xb2   :  { %v179_v31 = vmul.f32 %v178_v26, %v173_v25 }
  0xb4   :  { %v180_v36 = vadd.f32 %v179_v31, %v170_v29 }
  0xb6   :  { %v183_v34 = vpop.permute.xlu1 %182 }
  0xb7   :  { %v189_v37 = vmul.f32 %v188_v32, %v183_v34 }
  0xb9   :  { %v190_v38 = vadd.f32 %v189_v37, %v180_v36 }
  0xbb   :  { %v203_v42 = vpop.permute.xlu1 %202  ;;  %v200_v44 = vadd.f32 %v199_v41, %v190_v38 }
  0xbc   :  { %v209_v45 = vmul.f32 %v208_v43, %v203_v42 }
  0xbe   :  { %v210_v48 = vadd.f32 %v209_v45, %v200_v44 }
  0xc0   :  { %v213_v23 = vpop.permute.xlu1 %212 }
  0xc1   :  { %v219_v49 = vmul.f32 %v218_v46, %v213_v23 }
  0xc3   :  { %v220_v50 = vadd.f32 %v219_v49, %v210_v48 }
  0xc5   :  { %v233_v52 = vpop.permute.xlu1 %232  ;;  %v230_v54 = vadd.f32 %v229_v24, %v220_v50 }
  0xc6   :  { %v239_v55 = vmul.f32 %v238_v53, %v233_v52 }
  0xc8   :  { %v240_v59 = vadd.f32 %v239_v55, %v230_v54 }
  0xca   :  { %v243_v30 = vpop.permute.xlu1 %242 }
  0xcb   :  { %v249_v60 = vmul.f32 %v248_v57, %v243_v30 }
  0xcd   :  { %v250_v33 = vadd.f32 %v249_v60, %v240_v59 }
  0xcf   :  { %v263_v63 = vpop.permute.xlu1 %262  ;;  %v260_v39 = vadd.f32 %v259_v61, %v250_v33 }
  0xd0   :  { %v269_v0 = vmul.f32 %v268_v62, %v263_v63 }
  0xd2   :  { %v270_v1 = vadd.f32 %v269_v0, %v260_v39 }
  0xd4   :  { %v272_v2 = vrot.slane %v270_v1, 1  ;;  %283 = vst [vmem:[%s442_s5] sm:$0x4] %v270_v1 }
  0xd6   :  { %v274_v3 = vsub.f32 %v270_v1, %v272_v2 }
  0xd8   :  { %v275_v4 = vmul.f32 1.442695, %v274_v3 }
  0xda   :  { %327 = vpow2.f32 %v275_v4 }
  0xe4   :  { %v328_v5 = vpop.eup %327 }
  0xe5   :  { %v277_v6 = vadd.f32 1.0, %v328_v5 }
  0xe7   :  { %329 = vrcp.f32 %v277_v6 }
  0xf1   :  { %v330_v7 = vpop.eup %329 }
  0xf2   :  { %v280_v8 = vsub.f32 1.0, %v330_v7  ;;  %282 = vst [vmem:[%s442_s5 + $0x1] sm:$0x1] %v330_v7 }
  0xf4   :  { %281 = vst [vmem:[%s442_s5] sm:$0x1] %v280_v8 }

</bundles_post_ra>
